<compile_context>
chip_gen: v5e
topology: v5e:2x2
jax: 0.10.0
libtpu: 0.0.40
codegen_flags: <defaults>
</compile_context>

<pallas_src>
import jax
import jax.numpy as jnp
from jax.experimental import pallas as pl
from jax.experimental.pallas import tpu as pltpu

PAD = '<PAD>'
ATOMIC = {'(S)': 0, '(S[dcl])': 1, '(S[wq])': 2, '(S[q])': 3, '(S[qem])': 4,
          '(S[em])': 5, '(S[bem])': 6, '(S[b])': 7, '(S[frg])': 8, '(S[for])': 9,
          '(S[intj])': 10, '(S[inv])': 11, '(S[to])': 12, '(S[pss])': 13,
          '(S[pt])': 14, '(S[ng])': 15, '(S[as])': 16, '(S[asup])': 17,
          '(S[poss])': 18, '(S[adj])': 19, '(NP)': 20, '(NP[nb])': 21,
          '(NP[expl])': 22, '(NP[thr])': 23, '(N)': 24, '(N[num])': 25,
          '(PP)': 26, '(,)': 27, '(.)': 28, '(conj)': 29, '(:)': 30, '(;)': 31,
          '(RRB)': 32, '(LRB)': 33, '(/)': 34, '(\\)': 35}


def _round_up(x, m):
    return (x + m - 1) // m * m


# ----------------------------- Pallas kernel -----------------------------
def _matmul_kernel(a_ref, b_ref, o_ref):
    # One MXU dot per invocation: RHS fully resident, no K reduction axis,
    # bf16 inputs with f32 accumulation.
    o_ref[...] = jnp.dot(a_ref[...], b_ref[...],
                         preferred_element_type=jnp.float32)


def pallas_matmul(a, b, *, tm=256):
    """a: [M, K], b: [K, N] -> [M, N] f32. Inputs are cast to bf16.

    Caller is expected to pre-pad K (shared by a and b); for the small-M case
    the whole problem is a single VMEM-resident block (no grid), for large M
    we grid over M only and keep b resident.
    """
    M, K = a.shape
    K2, N = b.shape
    assert K == K2
    a = a.astype(jnp.bfloat16)
    b = b.astype(jnp.bfloat16)

    if M <= tm:
        # Entire problem (~<1 MB) is VMEM-resident on every TPU generation:
        # single block, no grid, no scratch, no accumulator round-trip.
        return pl.pallas_call(
            _matmul_kernel,
            out_shape=jax.ShapeDtypeStruct((M, N), jnp.float32),
        )(a, b)

    # Large-batch path: stream 256-row LHS tiles over M; b is one resident
    # block (re-used across all grid steps), output block is lane-dense (full N).
    Mp = _round_up(M, tm)
    if Mp != M:
        a = jnp.pad(a, ((0, Mp - M), (0, 0)))
    out = pl.pallas_call(
        _matmul_kernel,
        out_shape=jax.ShapeDtypeStruct((Mp, N), jnp.float32),
        grid_spec=pltpu.PrefetchScalarGridSpec(
            num_scalar_prefetch=0,
            grid=(Mp // tm,),
            in_specs=[pl.BlockSpec((tm, K), lambda i: (i, 0)),
                      pl.BlockSpec((K, N), lambda i: (0, 0))],
            out_specs=pl.BlockSpec((tm, N), lambda i: (i, 0))),
        compiler_params=pltpu.CompilerParams(
            dimension_semantics=("parallel",)),
    )(a, b)
    return out[:M]


# --------------------------- AddressMap (JAX) -----------------------------
class AddressMap:
    def __init__(self, src_address_dim, tgt_address_dim, src_out_to_ix,
                 tgt_out_to_ix=ATOMIC, key=None):
        self.src_address_dim = src_address_dim
        self.src_out_to_ix = dict(src_out_to_ix)
        if PAD not in self.src_out_to_ix:
            self.src_out_to_ix[PAD] = len(self.src_out_to_ix)
        self.src_output_dim = len(self.src_out_to_ix)
        self.src_ix_to_out = {v: k for k, v in self.src_out_to_ix.items()}

        self.address_dim = tgt_address_dim
        self.out_to_ix = dict(tgt_out_to_ix or ATOMIC)
        if PAD not in self.out_to_ix:
            self.out_to_ix[PAD] = len(self.out_to_ix)
        self.output_dim = len(self.out_to_ix)
        self.ix_to_out = {v: k for k, v in self.out_to_ix.items()}

        # Deterministic synthetic `self.map` parameter:
        # [src_address_dim, src_output_dim, tgt_address_dim * output_dim]
        key = jax.random.PRNGKey(0) if key is None else key
        self.map = 0.02 * jax.random.normal(
            key,
            (self.src_address_dim, self.src_output_dim,
             self.address_dim * self.output_dim),
            dtype=jnp.float32)

        # Flatten the weight once; cache a K-padded bf16 RHS per n_addresses
        # so forward() never re-reshapes / re-pads / re-casts the parameter.
        self._w_flat = self.map.reshape(
            self.src_address_dim * self.src_output_dim,
            self.address_dim * self.output_dim)
        self._rhs_cache = {}

    def _rhs(self, n_addresses):
        """Cached bf16 RHS [Kp, N]; K zero-padded up to a multiple of 128."""
        if n_addresses not in self._rhs_cache:
            K = n_addresses * self.src_output_dim
            Kp = _round_up(K, 128)
            w = self._w_flat[:K]
            if Kp != K:
                w = jnp.pad(w, ((0, Kp - K), (0, 0)))
            self._rhs_cache[n_addresses] = w.astype(jnp.bfloat16)
        return self._rhs_cache[n_addresses]

    def forward(self, x, indices=False, norm=False, argmax=False):
        assert not (norm and argmax)
        batch_size, n_addresses = x.shape[0], x.shape[1]
        assert n_addresses <= self.src_address_dim, \
            "n_addresses exceeds src_address_dim"

        if indices:
            # one_hot(x) @ map  ==  gather map[a, x[:, a], :] and sum over a.
            # Avoids a dense one-hot and a 37x-larger matmul (perf review).
            gathered = self.map[:n_addresses][
                jnp.arange(n_addresses)[None, :], x]       # [B, n_addr, N]
            out = jnp.sum(gathered, axis=1)                 # [B, N] f32
        else:
            n_outputs = x.shape[2]
            if n_outputs < self.src_output_dim:
                x = jnp.pad(
                    x, ((0, 0), (0, 0), (0, self.src_output_dim - n_outputs)))
            a = x.reshape(batch_size, n_addresses * self.src_output_dim)
            b = self._rhs(n_addresses)                      # [Kp, N] bf16
            Kp, K = b.shape[0], a.shape[1]
            if Kp != K:
                a = jnp.pad(a, ((0, 0), (0, Kp - K)))
            out = pallas_matmul(a, b)                       # [B, N] f32

        out = out.reshape(-1, self.address_dim, self.output_dim)
        if argmax:
            out = jnp.argmax(out, axis=2)
        elif norm:
            # TODO(synk): `self.norm` is not defined in the reference module
            # snippet; leaving this branch as identity.
            pass
        return out


# ------------------------------- main --------------------------------------
if __name__ == "__main__":
    key = jax.random.PRNGKey(0)
    k_map, k_x, k_idx = jax.random.split(key, 3)

    src_address_dim = 16
    tgt_address_dim = 8
    n_addresses = 8
    batch = 2
    n_outputs = 30  # < src_output_dim (37) to exercise the zero-pad branch

    am = AddressMap(src_address_dim, tgt_address_dim, dict(ATOMIC),
                    tgt_out_to_ix=ATOMIC, key=k_map)

    x = jax.random.normal(k_x, (batch, n_addresses, n_outputs),
                          dtype=jnp.float32)

    out = jax.block_until_ready(am.forward(x))
    assert out.shape == (batch, am.address_dim, am.output_dim), out.shape

    # Pure-JAX f32 reference of the hot path (HIGHEST precision). Kernel runs
    # bf16 inputs with f32 accumulation -> relaxed tolerance.
    x_pad = jnp.concatenate(
        [x, jnp.zeros((batch, n_addresses, am.src_output_dim - n_outputs),
                      dtype=x.dtype)], axis=2)
    a_ref = x_pad.reshape(batch, n_addresses * am.src_output_dim)
    b_ref = am.map[:n_addresses].reshape(n_addresses * am.src_output_dim, -1)
    ref = jnp.matmul(a_ref, b_ref,
                     precision=jax.lax.Precision.HIGHEST
                     ).reshape(-1, am.address_dim, am.output_dim)
    assert jnp.allclose(out, ref, atol=2e-2, rtol=2e-2)

    # argmax path: must be consistent with the dense output of the same path.
    out_arg = jax.block_until_ready(am.forward(x, argmax=True))
    assert out_arg.shape == (batch, am.address_dim)
    assert jnp.array_equal(out_arg, jnp.argmax(out, axis=2))

    # indices=True path (gather + sum, no matmul) vs one-hot @ map reference.
    xi = jax.random.randint(k_idx, (batch, n_addresses), 0, am.src_output_dim)
    out_idx = jax.block_until_ready(am.forward(xi, indices=True))
    oh = jax.nn.one_hot(xi, am.src_output_dim, dtype=jnp.float32)
    ref_idx = jnp.matmul(oh.reshape(batch, -1), b_ref,
                         precision=jax.lax.Precision.HIGHEST
                         ).reshape(-1, am.address_dim, am.output_dim)
    assert out_idx.shape == (batch, am.address_dim, am.output_dim)
    assert jnp.allclose(out_idx, ref_idx, atol=1e-4, rtol=1e-4)

    print("KERNEL_OK")
</pallas_src>

<mosaic_0001>
module attributes {stable_mosaic.version = 11 : i64} {
  func.func @_matmul_kernel(%arg0: memref<2x384xbf16, #tpu.memory_space<vmem>>, %arg1: memref<384x296xbf16, #tpu.memory_space<vmem>>, %arg2: memref<2x296xf32, #tpu.memory_space<vmem>>) attributes {dimension_semantics = [], scalar_prefetch = 0 : i64, scratch_operands = 0 : i64, tpu.core_type = #tpu.core_type<tc>} {
    %c0 = arith.constant 0 : index
    %c0_0 = arith.constant 0 : index
    %0 = vector.load %arg0[%c0, %c0_0] : memref<2x384xbf16, #tpu.memory_space<vmem>>, vector<2x384xbf16>
    %c0_1 = arith.constant 0 : index
    %c0_2 = arith.constant 0 : index
    %1 = vector.load %arg1[%c0_1, %c0_2] : memref<384x296xbf16, #tpu.memory_space<vmem>>, vector<384x296xbf16>
    %cst = arith.constant dense<0.000000e+00> : vector<2x296xf32>
    %2 = tpu.matmul %0, %1, %cst {dimension_numbers = #tpu.dot_dimension_numbers<[1], [0], [0], [1], [0, 0, 1, 1], [], []>} : vector<2x384xbf16>, vector<384x296xbf16>, vector<2x296xf32> -> vector<2x296xf32>
    %c0_3 = arith.constant 0 : index
    %c0_4 = arith.constant 0 : index
    %3 = vector.load %arg2[%c0_3, %c0_4] : memref<2x296xf32, #tpu.memory_space<vmem>>, vector<2x296xf32>
    tpu.vector_store %arg2[%c0_3, %c0_4], %2 {strides = array<i32>} : memref<2x296xf32, #tpu.memory_space<vmem>>, vector<2x296xf32>,
    return
  }
}

</mosaic_0001>

<bundles_post_ra>
// kernel: tpu_custom_call.1
= control target key start
LH: loop header
LB: loop body
LE: loop exit
PB: predicated region body
PF: predicated region fallthrough
CT: control target
= control target key end

     0   :  { %s1505_s0 = inlined_call_operand.vmem [shape: bf16[2,384], index: 0, kind: input, shape index: {}]   ;;  %s1506_s1 = inlined_call_operand.vmem [shape: bf16[384,296], index: 1, kind: input, shape index: {}]   ;;  %s1507_s2 = inlined_call_operand.hbm [shape: f32[2,296], index: 2, kind: output, shape index: {}]  }
   0x1   :  { %v735_v0 = vld [vmem:[%s1506_s1 + $0xa8] sm:$0xf]  ;;  %v959_v1 = vld [vmem:[%s1506_s1 + $0xb0] sm:$0xf0]  ;;  %v723_v5 = vld [vmem:[%s1506_s1 + $0x90] sm:$0xf] }
   0x2   :  { %v831_v2 = vld [vmem:[%s1506_s1 + $0x168] sm:$0xf]  ;;  %v736_v3 = vor.u32 %v959_v1, %v735_v0  ;;  %v983_v4 = vld [vmem:[%s1506_s1 + $0x170] sm:$0xf0]  ;;  %v956_v6 = vld [vmem:[%s1506_s1 + $0x98] sm:$0xf0] }
   0x3   :  { %v832_v7 = vor.u32 %v983_v4, %v831_v2  ;;  %v819_v8 = vld [vmem:[%s1506_s1 + $0x150] sm:$0xf]  ;;  %v980_v9 = vld [vmem:[%s1506_s1 + $0x158] sm:$0xf0]  ;;  %v724_v10 = vor.u32 %v956_v6, %v723_v5  ;;  %v711_v12 = vld [vmem:[%s1506_s1 + $0x78] sm:$0xf] }
   0x4   :  { %501 = vmatpush.bf16.msra.mxu0 %v736_v3  ;;  %v820_v11 = vor.u32 %v980_v9, %v819_v8  ;;  %v953_v13 = vld [vmem:[%s1506_s1 + $0x80] sm:$0xf0]  ;;  %v807_v14 = vld [vmem:[%s1506_s1 + $0x138] sm:$0xf]  ;;  %v927_v16 = vld [vmem:[%s1506_s1 + $0x228] sm:$0xf] }
   0x5   :  { %514 = vmatpush.bf16.msra.mxu1 %v832_v7  ;;  %v977_v15 = vld [vmem:[%s1506_s1 + $0x140] sm:$0xf0]  ;;  %v1007_v17 = vld [vmem:[%s1506_s1 + $0x230] sm:$0xf0]  ;;  %v958_v19 = vld [vmem:[%s1506_s1 + $0xac] sm:$0xf]  ;;  %v712_v21 = vor.u32 %v953_v13, %v711_v12 }
   0x6   :  { %v928_v18 = vor.u32 %v1007_v17, %v927_v16  ;;  %v737_v20 = vld [vmem:[%s1506_s1 + $0xb4] sm:$0xf0]  ;;  %v699_v22 = vld [vmem:[%s1506_s1 + $0x60] sm:$0xf]  ;;  %v950_v23 = vld [vmem:[%s1506_s1 + $0x68] sm:$0xf0]  ;;  %v808_v25 = vor.u32 %v977_v15, %v807_v14 }
   0x7   :  { %v740_v24 = vor.u32 %v958_v19, %v737_v20  ;;  %v915_v26 = vld [vmem:[%s1506_s1 + $0x210] sm:$0xf]  ;;  %v1004_v27 = vld [vmem:[%s1506_s1 + $0x218] sm:$0xf0]  ;;  %v955_v28 = vld [vmem:[%s1506_s1 + $0x94] sm:$0xf]  ;;  %v700_v35 = vor.u32 %v950_v23, %v699_v22 }
   0x8   :  { %502 = vmatpush.bf16.msra.mxu0 %v724_v10  ;;  %527 = vmatpush.bf16.msra.mxu2 %v928_v18  ;;  %v795_v29 = vld [vmem:[%s1506_s1 + $0x120] sm:$0xf]  ;;  %v974_v30 = vld [vmem:[%s1506_s1 + $0x128] sm:$0xf0]  ;;  %v916_v31 = vor.u32 %v1004_v27, %v915_v26  ;;  %v903_v34 = vld [vmem:[%s1506_s1 + $0x1f8] sm:$0xf] }
   0x9   :  { %515 = vmatpush.bf16.msra.mxu1 %v820_v11  ;;  %540 = vmatpush.bf16.msra.mxu3 %v740_v24  ;;  %v725_v32 = vld [vmem:[%s1506_s1 + $0x9c] sm:$0xf0]  ;;  %v1001_v36 = vld [vmem:[%s1506_s1 + $0x200] sm:$0xf0]  ;;  %v952_v37 = vld [vmem:[%s1506_s1 + $0x7c] sm:$0xf]  ;;  %v796_v39 = vor.u32 %v974_v30, %v795_v29 }
   0xa   :  { %v728_v33 = vor.u32 %v955_v28, %v725_v32  ;;  %v713_v38 = vld [vmem:[%s1506_s1 + $0x84] sm:$0xf0]  ;;  %v947_v41 = vld [vmem:[%s1506_s1 + $0x50] sm:$0xf0]  ;;  %v904_v43 = vor.u32 %v1001_v36, %v903_v34  ;;  %v891_v46 = vld [vmem:[%s1506_s1 + $0x1e0] sm:$0xf] }
   0xb   :  { %v687_v40 = vld [vmem:[%s1506_s1 + $0x48] sm:$0xf]  ;;  %v971_v44 = vld [vmem:[%s1506_s1 + $0x110] sm:$0xf0]  ;;  %v716_v45 = vor.u32 %v952_v37, %v713_v38  ;;  %v998_v47 = vld [vmem:[%s1506_s1 + $0x1e8] sm:$0xf0] }
   0xc   :  { %503 = vmatpush.bf16.msra.mxu0 %v712_v21  ;;  %v783_v42 = vld [vmem:[%s1506_s1 + $0x108] sm:$0xf]  ;;  %528 = vmatpush.bf16.msra.mxu2 %v916_v31  ;;  %v949_v48 = vld [vmem:[%s1506_s1 + $0x64] sm:$0xf]  ;;  %v701_v49 = vld [vmem:[%s1506_s1 + $0x6c] sm:$0xf0]  ;;  %v688_v50 = vor.u32 %v947_v41, %v687_v40  ;;  %v892_v55 = vor.u32 %v998_v47, %v891_v46 }
   0xd   :  { %516 = vmatpush.bf16.msra.mxu1 %v808_v25  ;;  %541 = vmatpush.bf16.msra.mxu3 %v728_v33  ;;  %v784_v51 = vor.u32 %v971_v44, %v783_v42  ;;  %v675_v52 = vld [vmem:[%s1506_s1 + $0x30] sm:$0xf]  ;;  %v944_v53 = vld [vmem:[%s1506_s1 + $0x38] sm:$0xf0]  ;;  %v704_v57 = vor.u32 %v949_v48, %v701_v49  ;;  %v879_v58 = vld [vmem:[%s1506_s1 + $0x1c8] sm:$0xf] }
   0xe   :  { %v771_v54 = vld [vmem:[%s1506_s1 + $0xf0] sm:$0xf]  ;;  %v968_v56 = vld [vmem:[%s1506_s1 + $0xf8] sm:$0xf0]  ;;  %v995_v59 = vld [vmem:[%s1506_s1 + $0x1d0] sm:$0xf0]  ;;  %v676_v62 = vor.u32 %v944_v53, %v675_v52 }
   0xf   :  { %v946_v60 = vld [vmem:[%s1506_s1 + $0x4c] sm:$0xf]  ;;  %v689_v61 = vld [vmem:[%s1506_s1 + $0x54] sm:$0xf0]  ;;  %v772_v63 = vor.u32 %v968_v56, %v771_v54  ;;  %v941_v1 = vld [vmem:[%s1506_s1 + $0x20] sm:$0xf0]  ;;  %v880_v3 = vor.u32 %v995_v59, %v879_v58 }
  0x10   :  { %504 = vmatpush.bf16.msra.mxu0 %v700_v35  ;;  %529 = vmatpush.bf16.msra.mxu2 %v904_v43  ;;  %v663_v0 = vld [vmem:[%s1506_s1 + $0x18] sm:$0xf]  ;;  %v965_v4 = vld [vmem:[%s1506_s1 + $0xe0] sm:$0xf0]  ;;  %v692_v5 = vor.u32 %v946_v60, %v689_v61  ;;  %v867_v6 = vld [vmem:[%s1506_s1 + $0x1b0] sm:$0xf] }
  0x11   :  { %517 = vmatpush.bf16.msra.mxu1 %v796_v39  ;;  %542 = vmatpush.bf16.msra.mxu3 %v716_v45  ;;  %v759_v2 = vld [vmem:[%s1506_s1 + $0xd8] sm:$0xf]  ;;  %v992_v7 = vld [vmem:[%s1506_s1 + $0x1b8] sm:$0xf0]  ;;  %v943_v8 = vld [vmem:[%s1506_s1 + $0x34] sm:$0xf]  ;;  %v664_v10 = vor.u32 %v941_v1, %v663_v0 }
  0x12   :  { %v677_v9 = vld [vmem:[%s1506_s1 + $0x3c] sm:$0xf0]  ;;  %v760_v12 = vor.u32 %v965_v4, %v759_v2  ;;  %v938_v13 = vld [vmem:[%s1506_s1 + $0x8] sm:$0xf0]  ;;  %v833_v15 = vld [vmem:[%s1506_s1 + $0x174] sm:$0xf0]  ;;  %v868_v16 = vor.u32 %v992_v7, %v867_v6 }
  0x13   :  { %v651_v11 = vld [vmem:[%s1506_s1] sm:$0xf]  ;;  %v982_v14 = vld [vmem:[%s1506_s1 + $0x16c] sm:$0xf]  ;;  %v680_v20 = vor.u32 %v943_v8, %v677_v9  ;;  %v929_v21 = vld [vmem:[%s1506_s1 + $0x234] sm:$0xf0] }
  0x14   :  { %505 = vmatpush.bf16.msra.mxu0 %v688_v50  ;;  %530 = vmatpush.bf16.msra.mxu2 %v892_v55  ;;  %v747_v17 = vld [vmem:[%s1506_s1 + $0xc0] sm:$0xf]  ;;  %v962_v18 = vld [vmem:[%s1506_s1 + $0xc8] sm:$0xf0]  ;;  %v855_v22 = vld [vmem:[%s1506_s1 + $0x198] sm:$0xf]  ;;  %v652_v24 = vor.u32 %v938_v13, %v651_v11  ;;  %v836_v27 = vor.u32 %v982_v14, %v833_v15 }
  0x15   :  { %518 = vmatpush.bf16.msra.mxu1 %v784_v51  ;;  %543 = vmatpush.bf16.msra.mxu3 %v704_v57  ;;  %v1006_v19 = vld [vmem:[%s1506_s1 + $0x22c] sm:$0xf]  ;;  %v989_v23 = vld [vmem:[%s1506_s1 + $0x1a0] sm:$0xf0]  ;;  %v940_v25 = vld [vmem:[%s1506_s1 + $0x1c] sm:$0xf]  ;;  %v748_v28 = vor.u32 %v962_v18, %v747_v17 }
  0x16   :  { %v665_v26 = vld [vmem:[%s1506_s1 + $0x24] sm:$0xf0]  ;;  %v979_v29 = vld [vmem:[%s1506_s1 + $0x154] sm:$0xf]  ;;  %v821_v30 = vld [vmem:[%s1506_s1 + $0x15c] sm:$0xf0]  ;;  %v932_v32 = vor.u32 %v1006_v19, %v929_v21  ;;  %v856_v35 = vor.u32 %v989_v23, %v855_v22 }
  0x17   :  { %v12_v31 = vld [vmem:[%s1505_s0] sm:$0x7]  ;;  %v1003_v33 = vld [vmem:[%s1506_s1 + $0x214] sm:$0xf]  ;;  %v668_v36 = vor.u32 %v940_v25, %v665_v26  ;;  %v986_v38 = vld [vmem:[%s1506_s1 + $0x188] sm:$0xf0]  ;;  %v824_v43 = vor.u32 %v979_v29, %v821_v30 }
  0x18   :  { %506 = vmatpush.bf16.msra.mxu0 %v676_v62  ;;  %531 = vmatpush.bf16.msra.mxu2 %v880_v3  ;;  %v917_v34 = vld [vmem:[%s1506_s1 + $0x21c] sm:$0xf0]  ;;  %110 = vst [vmem:[#allocation1] ss:$9 sm:$0xff] %v12_v31  ;;  %v937_v39 = vld [vmem:[%s1506_s1 + $0x4] sm:$0xf] }
  0x19   :  { %519 = vmatpush.bf16.msra.mxu1 %v772_v63  ;;  %544 = vmatpush.bf16.msra.mxu3 %v692_v5  ;;  %v843_v37 = vld [vmem:[%s1506_s1 + $0x180] sm:$0xf]  ;;  %v653_v40 = vld [vmem:[%s1506_s1 + $0xc] sm:$0xf0]  ;;  %v960_v42 = vld [vmem:[%s1506_s1 + $0xb8] sm:$0xf0]  ;;  %v920_v46 = vor.u32 %v1003_v33, %v917_v34 }
  0x1a   :  { %v743_v41 = vld [vmem:[%s1506_s1 + $0xb0] sm:$0xf]  ;;  %v984_v45 = vld [vmem:[%s1506_s1 + $0x178] sm:$0xf0]  ;;  %v809_v48 = vld [vmem:[%s1506_s1 + $0x144] sm:$0xf0]  ;;  %v844_v49 = vor.u32 %v986_v38, %v843_v37  ;;  %v656_v52 = vor.u32 %v937_v39, %v653_v40 }
  0x1b   :  { %v839_v44 = vld [vmem:[%s1506_s1 + $0x170] sm:$0xf]  ;;  %v976_v47 = vld [vmem:[%s1506_s1 + $0x13c] sm:$0xf]  ;;  %v905_v51 = vld [vmem:[%s1506_s1 + $0x204] sm:$0xf0]  ;;  %v744_v53 = vor.u32 %v960_v42, %v743_v41 }
  0x1c   :  { %507 = vmatpush.bf16.msra.mxu0 %v664_v10  ;;  %532 = vmatpush.bf16.msra.mxu2 %v868_v16  ;;  %v1000_v50 = vld [vmem:[%s1506_s1 + $0x1fc] sm:$0xf]  ;;  %v840_v54 = vor.u32 %v984_v45, %v839_v44  ;;  %v731_v55 = vld [vmem:[%s1506_s1 + $0x98] sm:$0xf]  ;;  %v957_v56 = vld [vmem:[%s1506_s1 + $0xa0] sm:$0xf0]  ;;  %v812_v57 = vor.u32 %v976_v47, %v809_v48 }
  0x1d   :  { %520 = vmatpush.bf16.msra.mxu1 %v760_v12  ;;  %545 = vmatpush.bf16.msra.mxu3 %v680_v20  ;;  %v827_v59 = vld [vmem:[%s1506_s1 + $0x158] sm:$0xf]  ;;  %v981_v60 = vld [vmem:[%s1506_s1 + $0x160] sm:$0xf0]  ;;  %v908_v61 = vor.u32 %v1000_v50, %v905_v51  ;;  %v797_v63 = vld [vmem:[%s1506_s1 + $0x12c] sm:$0xf0]  ;;  %v732_v3 = vor.u32 %v957_v56, %v731_v55 }
  0x1e   :  { %v973_v62 = vld [vmem:[%s1506_s1 + $0x124] sm:$0xf]  ;;  %v893_v2 = vld [vmem:[%s1506_s1 + $0x1ec] sm:$0xf0]  ;;  %v828_v5 = vor.u32 %v981_v60, %v827_v59  ;;  %v719_v6 = vld [vmem:[%s1506_s1 + $0x80] sm:$0xf] }
  0x1f   :  { %v1301_v58 = vld [vmem:[#allocation1] sm:$0xff]  ;;  %v1315_v0 = vld [vmem:[#allocation1 + $0x9] sm:$0xff]  ;;  %v1323_v4 = vld [vmem:[#allocation1 + $0x12] sm:$0xff]  ;;  %v800_v8 = vor.u32 %v973_v62, %v797_v63 }
  0x20   :  { %508 = vmatpush.bf16.msra.mxu0 %v652_v24  ;;  %533 = vmatpush.bf16.msra.mxu2 %v856_v35  ;;  %v997_v1 = vld [vmem:[%s1506_s1 + $0x1e4] sm:$0xf]  ;;  %v954_v7 = vld [vmem:[%s1506_s1 + $0x88] sm:$0xf0]  ;;  %v815_v9 = vld [vmem:[%s1506_s1 + $0x140] sm:$0xf] }
  0x21   :  { %521 = vmatpush.bf16.msra.mxu1 %v748_v28  ;;  %546 = vmatpush.bf16.msra.mxu3 %v668_v36  ;;  %v978_v10 = vld [vmem:[%s1506_s1 + $0x148] sm:$0xf0]  ;;  %v896_v11 = vor.u32 %v997_v1, %v893_v2  ;;  %v785_v13 = vld [vmem:[%s1506_s1 + $0x114] sm:$0xf0]  ;;  %v720_v16 = vor.u32 %v954_v7, %v719_v6  ;;  %v707_v18 = vld [vmem:[%s1506_s1 + $0x68] sm:$0xf] }
  0x22   :  { %v970_v12 = vld [vmem:[%s1506_s1 + $0x10c] sm:$0xf]  ;;  %v881_v15 = vld [vmem:[%s1506_s1 + $0x1d4] sm:$0xf0]  ;;  %v816_v17 = vor.u32 %v978_v10, %v815_v9  ;;  %v951_v19 = vld [vmem:[%s1506_s1 + $0x70] sm:$0xf0] }
  0x23   :  { %509 = vmatmul.bf16.vlgmr.msra.gmra.mxu0 %v1301_v58  ;;  %v994_v14 = vld [vmem:[%s1506_s1 + $0x1cc] sm:$0xf]  ;;  %v788_v20 = vor.u32 %v970_v12, %v785_v13  ;;  %v803_v21 = vld [vmem:[%s1506_s1 + $0x128] sm:$0xf]  ;;  %v975_v22 = vld [vmem:[%s1506_s1 + $0x130] sm:$0xf0]  ;;  %v708_v28 = vor.u32 %v951_v19, %v707_v18 }
  0x24   :  { %553 = vmatpush.bf16.msrb.mxu0 %v836_v27  ;;  %534 = vmatpush.bf16.msra.mxu2 %v844_v49  ;;  %v884_v23 = vor.u32 %v994_v14, %v881_v15  ;;  %v967_v24 = vld [vmem:[%s1506_s1 + $0xf4] sm:$0xf]  ;;  %v773_v25 = vld [vmem:[%s1506_s1 + $0xfc] sm:$0xf0]  ;;  %v804_v29 = vor.u32 %v975_v22, %v803_v21  ;;  %v695_v30 = vld [vmem:[%s1506_s1 + $0x50] sm:$0xf] }
  0x25   :  { %566 = vmatpush.bf16.msrb.mxu1 %v932_v32  ;;  %547 = vmatpush.bf16.msra.mxu3 %v656_v52  ;;  %v991_v26 = vld [vmem:[%s1506_s1 + $0x1b4] sm:$0xf]  ;;  %v869_v27 = vld [vmem:[%s1506_s1 + $0x1bc] sm:$0xf0]  ;;  %v948_v31 = vld [vmem:[%s1506_s1 + $0x58] sm:$0xf0]  ;;  %v776_v32 = vor.u32 %v967_v24, %v773_v25 }
  0x26   :  { %522 = vmatmul.bf16.vlgmr.msra.gmra.mxu1 %v1315_v0  ;;  %v791_v33 = vld [vmem:[%s1506_s1 + $0x110] sm:$0xf]  ;;  %v972_v34 = vld [vmem:[%s1506_s1 + $0x118] sm:$0xf0] }
  0x27   :  { %535 = vmatmul.bf16.vlgmr.msra.gmra.mxu2 %v1323_v4 }
  0x28   :  { %554 = vmatpush.bf16.msrb.mxu0 %v824_v43  ;;  %579 = vmatpush.bf16.msrb.mxu2 %v744_v53 }
  0x29   :  { %567 = vmatpush.bf16.msrb.mxu1 %v920_v46  ;;  %592 = vmatpush.bf16.msrb.mxu3 %v840_v54 }
  0x2a   :  { %548 = vmatmul.bf16.vlgmr.msra.gmra.mxu3 %v1301_v58 }
  0x2c   :  { %555 = vmatpush.bf16.msrb.mxu0 %v812_v57  ;;  %580 = vmatpush.bf16.msrb.mxu2 %v732_v3 }
  0x2d   :  { %568 = vmatpush.bf16.msrb.mxu1 %v908_v61  ;;  %593 = vmatpush.bf16.msrb.mxu3 %v828_v5 }
  0x30   :  { %556 = vmatpush.bf16.msrb.mxu0 %v800_v8  ;;  %581 = vmatpush.bf16.msrb.mxu2 %v720_v16 }
  0x31   :  { %569 = vmatpush.bf16.msrb.mxu1 %v896_v11  ;;  %594 = vmatpush.bf16.msrb.mxu3 %v816_v17 }
  0x34   :  { %557 = vmatpush.bf16.msrb.mxu0 %v788_v20 }
  0x35   :  { %7 = vsyncpa [#allocation3], 0  ;;  %570 = vmatpush.bf16.msrb.mxu1 %v884_v23  ;;  %v872_v35 = vor.u32 %v991_v26, %v869_v27  ;;  %v964_v36 = vld [vmem:[%s1506_s1 + $0xdc] sm:$0xf]  ;;  %v761_v37 = vld [vmem:[%s1506_s1 + $0xe4] sm:$0xf0]  ;;  %582 = vmatpush.bf16.msrb.mxu2 %v708_v28  ;;  %v696_v40 = vor.u32 %v948_v31, %v695_v30  ;;  %v792_v41 = vor.u32 %v972_v34, %v791_v33 }
  0x36   :  { %v988_v38 = vld [vmem:[%s1506_s1 + $0x19c] sm:$0xf]  ;;  %v857_v39 = vld [vmem:[%s1506_s1 + $0x1a4] sm:$0xf0]  ;;  %595 = vmatpush.bf16.msrb.mxu3 %v804_v29  ;;  %v683_v42 = vld [vmem:[%s1506_s1 + $0x38] sm:$0xf]  ;;  %v764_v44 = vor.u32 %v964_v36, %v761_v37 }
  0x37   :  { %v945_v43 = vld [vmem:[%s1506_s1 + $0x40] sm:$0xf0]  ;;  %v779_v45 = vld [vmem:[%s1506_s1 + $0xf8] sm:$0xf]  ;;  %v860_v47 = vor.u32 %v988_v38, %v857_v39  ;;  %v749_v49 = vld [vmem:[%s1506_s1 + $0xcc] sm:$0xf0] }
  0x38   :  { %558 = vmatpush.bf16.msrb.mxu0 %v776_v32  ;;  %v969_v46 = vld [vmem:[%s1506_s1 + $0x100] sm:$0xf0]  ;;  %v935_v50 = vld [vmem:[%s1506_s1 + $0x230] sm:$0xf]  ;;  %v1008_v51 = vld [vmem:[%s1506_s1 + $0x238] sm:$0xf0]  ;;  %v684_v54 = vor.u32 %v945_v43, %v683_v42 }
  0x39   :  { %571 = vmatpush.bf16.msrb.mxu1 %v872_v35  ;;  %v961_v48 = vld [vmem:[%s1506_s1 + $0xc4] sm:$0xf]  ;;  %v845_v53 = vld [vmem:[%s1506_s1 + $0x18c] sm:$0xf0]  ;;  %583 = vmatpush.bf16.msrb.mxu2 %v696_v40  ;;  %v780_v55 = vor.u32 %v969_v46, %v779_v45  ;;  %v671_v56 = vld [vmem:[%s1506_s1 + $0x20] sm:$0xf]  ;;  %v936_v62 = vor.u32 %v1008_v51, %v935_v50 }
  0x3a   :  { %v985_v52 = vld [vmem:[%s1506_s1 + $0x184] sm:$0xf]  ;;  %596 = vmatpush.bf16.msrb.mxu3 %v792_v41  ;;  %v942_v57 = vld [vmem:[%s1506_s1 + $0x28] sm:$0xf0]  ;;  %v752_v59 = vor.u32 %v961_v48, %v749_v49  ;;  %v767_v60 = vld [vmem:[%s1506_s1 + $0xe0] sm:$0xf] }
  0x3b   :  { %v966_v61 = vld [vmem:[%s1506_s1 + $0xe8] sm:$0xf0]  ;;  %v848_v63 = vor.u32 %v985_v52, %v845_v53  ;;  %v923_v1 = vld [vmem:[%s1506_s1 + $0x218] sm:$0xf]  ;;  %v1005_v2 = vld [vmem:[%s1506_s1 + $0x220] sm:$0xf0]  ;;  %v672_v3 = vor.u32 %v942_v57, %v671_v56 }
  0x3c   :  { %559 = vmatpush.bf16.msrb.mxu0 %v764_v44  ;;  %v768_v5 = vor.u32 %v966_v61, %v767_v60  ;;  %v659_v6 = vld [vmem:[%s1506_s1 + $0x8] sm:$0xf]  ;;  %v939_v7 = vld [vmem:[%s1506_s1 + $0x10] sm:$0xf0]  ;;  %v924_v10 = vor.u32 %v1005_v2, %v923_v1  ;;  %v911_v11 = vld [vmem:[%s1506_s1 + $0x200] sm:$0xf] }
  0x3d   :  { %572 = vmatpush.bf16.msrb.mxu1 %v860_v47  ;;  %584 = vmatpush.bf16.msrb.mxu2 %v684_v54  ;;  %v755_v8 = vld [vmem:[%s1506_s1 + $0xc8] sm:$0xf]  ;;  %v963_v9 = vld [vmem:[%s1506_s1 + $0xd0] sm:$0xf0]  ;;  %v1002_v12 = vld [vmem:[%s1506_s1 + $0x208] sm:$0xf0]  ;;  %v660_v13 = vor.u32 %v939_v7, %v659_v6 }
  0x3e   :  { %597 = vmatpush.bf16.msrb.mxu3 %v780_v55  ;;  %v756_v14 = vor.u32 %v963_v9, %v755_v8  ;;  %v912_v15 = vor.u32 %v1002_v12, %v911_v11  ;;  %v899_v16 = vld [vmem:[%s1506_s1 + $0x1e8] sm:$0xf]  ;;  %v999_v17 = vld [vmem:[%s1506_s1 + $0x1f0] sm:$0xf0]  ;;  %v887_v19 = vld [vmem:[%s1506_s1 + $0x1d0] sm:$0xf] }
  0x3f   :  { %v900_v18 = vor.u32 %v999_v17, %v899_v16  ;;  %v996_v20 = vld [vmem:[%s1506_s1 + $0x1d8] sm:$0xf0]  ;;  %v875_v22 = vld [vmem:[%s1506_s1 + $0x1b8] sm:$0xf]  ;;  %v863_v23 = vld [vmem:[%s1506_s1 + $0x1a0] sm:$0xf] }
  0x40   :  { %560 = vmatpush.bf16.msrb.mxu0 %v752_v59  ;;  %v888_v21 = vor.u32 %v996_v20, %v887_v19  ;;  %v990_v24 = vld [vmem:[%s1506_s1 + $0x1a8] sm:$0xf0]  ;;  %v851_v26 = vld [vmem:[%s1506_s1 + $0x188] sm:$0xf]  ;;  %v987_v27 = vld [vmem:[%s1506_s1 + $0x190] sm:$0xf0] }
  0x41   :  { %573 = vmatpush.bf16.msrb.mxu1 %v848_v63  ;;  %585 = vmatpush.bf16.msrb.mxu2 %v672_v3  ;;  %v864_v25 = vor.u32 %v990_v24, %v863_v23  ;;  %v852_v28 = vor.u32 %v987_v27, %v851_v26  ;;  %vm628_vm0 = vcmask 1043458   ;;  %vm623_vm1 = vcmask 1041408   ;;  %s640_s16 = sshll.u32 %s1507_s2, 4  ;;  %s641_s16 = int_to_ptr.hbm [resolvable:$true] %s640_s16 }
  0x42   :  { %598 = vmatpush.bf16.msrb.mxu3 %v768_v5  ;;  %vm629_vm2 = vmor %vm628_vm0, %vm623_vm1  ;;  %vm630_vm3 = vcmask 324612   ;;  %vm625_vm4 = vcmask 1043456  }
  0x43   :  { %561 = vmatmul.bf16.vlgmr.msrb.gmra.mxu0 %v1315_v0  ;;  %vm631_vm5 = vmor %vm630_vm3, %vm629_vm2 }
  0x44   :  { %605 = vmatpush.bf16.msra.mxu0 %v936_v62  ;;  %574 = vmatmul.bf16.vlgmr.msrb.gmra.mxu1 %v1323_v4 }
  0x45   :  { %586 = vmatpush.bf16.msrb.mxu2 %v660_v13 }
  0x46   :  { %599 = vmatpush.bf16.msrb.mxu3 %v756_v14 }
  0x48   :  { %606 = vmatpush.bf16.msra.mxu0 %v924_v10  ;;  %587 = vmatmul.bf16.vlgmr.msrb.gmra.mxu2 %v1301_v58  ;;  %v993_v58 = vld [vmem:[%s1506_s1 + $0x1c0] sm:$0xf0]  ;;  %s1036_s1 = smov [#allocation2]  }
  0x49   :  { %600 = vmatmul.bf16.vlgmr.msrb.gmra.mxu3 %v1315_v0  ;;  %v876_v0 = vor.u32 %v993_v58, %v875_v22  ;;  %s638_s13 = sshll.u32 %s1036_s1, 4  ;;  %s639_s13 = int_to_ptr.vmem [resolvable:$true] %s638_s13 }
  0x4c   :  { %607 = vmatpush.bf16.msra.mxu0 %v912_v15 }
  0x50   :  { %608 = vmatpush.bf16.msra.mxu0 %v900_v18 }
  0x54   :  { %609 = vmatpush.bf16.msra.mxu0 %v888_v21 }
  0x58   :  { %610 = vmatpush.bf16.msra.mxu0 %v876_v0 }
  0x5c   :  { %611 = vmatpush.bf16.msra.mxu0 %v864_v25 }
  0x60   :  { %612 = vmatpush.bf16.msra.mxu0 %v852_v28 }
  0x63   :  { %613 = vmatmul.bf16.vlgmr.msra.gmra.mxu0 %v1323_v4 }
  0xa0   :  { %v510_v29 = vpop.f32.mrf.mxu0 }
  0xa3   :  { %v523_v30 = vpop.f32.mrf.mxu1 }
  0xa4   :  { %v524_v4 = vadd.f32 %v523_v30, %v510_v29 }
  0xa8   :  { %v512_v31 = vpop.f32.mrf.mxu0 }
  0xaa   :  { %v536_v32 = vpop.f32.mrf.mxu2 }
  0xab   :  { %v525_v33 = vpop.f32.mrf.mxu1  ;;  %v537_v51 = vadd.f32 %v536_v32, %v524_v4 }
  0xad   :  { %v549_v34 = vpop.f32.mrf.mxu3 }
  0xb2   :  { %v538_v35 = vpop.f32.mrf.mxu2 }
  0xb5   :  { %v551_v36 = vpop.f32.mrf.mxu3 }
  0xc0   :  { %v562_v37 = vpop.f32.mrf.mxu0 }
  0xc1   :  { %v575_v38 = vpop.f32.mrf.mxu1  ;;  %v563_v44 = vadd.f32 %v562_v37, %v549_v34 }
  0xc3   :  { %v576_v46 = vadd.f32 %v575_v38, %v563_v44 }
  0xc5   :  { %v621_v48 = vrot.slane %v576_v46, 6 }
  0xc7   :  { %v624_v53 = vsel %vm623_vm1, %v537_v51, %v621_v48 }
  0xc8   :  { %v564_v39 = vpop.f32.mrf.mxu0 }
  0xc9   :  { %v577_v40 = vpop.f32.mrf.mxu1 }
  0xcb   :  { %v588_v41 = vpop.f32.mrf.mxu2 }
  0xcc   :  { %v601_v42 = vpop.f32.mrf.mxu3 }
  0xcd   :  { %v602_v47 = vadd.f32 %v601_v42, %v588_v41 }
  0xd3   :  { %v590_v43 = vpop.f32.mrf.mxu2 }
  0xd4   :  { %v603_v45 = vpop.f32.mrf.mxu3 }
  0xe0   :  { %v614_v49 = vpop.f32.mrf.mxu0 }
  0xe1   :  { %v615_v50 = vadd.f32 %v614_v49, %v602_v47 }
  0xe3   :  { %v622_v52 = vrot.slane %v615_v50, 4 }
  0xe5   :  { %v626_v54 = vsel %vm625_vm4, %v624_v53, %v622_v52 }
  0xe6   :  { %632 = vst.msk [vmem:[#allocation2] sm:$0x3f] %vm631_vm5, %v626_v54 }
  0xe7   :  { %643 = dma.vmem_to_hbm [thread:$0]  %s639_s13, 96, %s641_s16, [#allocation3]  }
  0xe8   :  { %v616_v55 = vpop.f32.mrf.mxu0 }
  0xe9   :  { %1034 = dma.done.wait [#allocation3], 96  }
  0xea   :  { %1035 = vsyncadd [#allocation3], 4294967200 }
  0xeb   :  { %648 = vsyncpa [#allocation3], 1 }

</bundles_post_ra>
